<compile_context>
chip_gen: v5e
topology: v5e:2x2
jax: 0.10.0
libtpu: 0.0.40
codegen_flags: <defaults>
</compile_context>

<pallas_src>
import functools

import jax
import jax.numpy as jnp
import numpy as np
from jax import lax
from jax.experimental import pallas as pl
from jax.experimental.pallas import tpu as pltpu

VOCAB_N, VOCAB_V, VOCAB_D = 92, 130, 203
LOSS_WEIGHTS = {"loss_notes": 1.0, "loss_velocity": 1.0, "loss_duration": 1.0}

# Class weights from the PyTorch module.  The kernel derives its per-token
# weights from these constants; keep them in sync with make_criterion_buffers.
#   notes / velocity: w[1] = 0, w[2] = 0.05, else 1
#   duration: ignore_index=1  ==  unit weights with class 1 zeroed
_W_CLASS1 = 0.0
_W_CLASS2_NV = 0.05

_LANES = 128      # lane width of the packed partial output
_CHUNK = 64       # in-kernel sub-chunk (tokens) processed per fori_loop step
_MAX_TILE = 2048  # max tokens per grid step (BlockSpec tile)
_NUM_ROWS = 8     # packed partial-output sublanes (rows 0-5 used)


def _round_up(x, m):
    return ((x + m - 1) // m) * m


def make_criterion_buffers():
    """Explicit weight vectors (used by the pure-JAX reference)."""
    w_n = jnp.ones((VOCAB_N,), jnp.float32).at[1].set(_W_CLASS1).at[2].set(_W_CLASS2_NV)
    w_v = jnp.ones((VOCAB_V,), jnp.float32).at[1].set(_W_CLASS1).at[2].set(_W_CLASS2_NV)
    w_d = jnp.ones((VOCAB_D,), jnp.float32).at[1].set(0.0)
    return w_n, w_v, w_d


# ----------------------------------------------------------------------------
# Fused Pallas kernel: weighted cross-entropy partial sums for all three heads
# over one tile of tokens.  Emits one packed (1, 8, 128) partial per grid step
# (rows 0-2 = numerators, rows 3-5 = denominators).
# ----------------------------------------------------------------------------
def _criterion_kernel(n_ref, v_ref, d_ref, y_ref, out_ref, *, n_tok, chunk):
    tile = n_ref.shape[0]
    n_chunks = tile // chunk
    unroll = min(4, n_chunks)
    # Only the last tile can be ragged; if the grid covers n_tok exactly we
    # statically drop all masking work.
    needs_mask = (n_tok % tile) != 0
    base = pl.program_id(0) * tile

    # loop-invariant row iota (hoisted; only needed for the ragged mask)
    row0 = lax.broadcasted_iota(jnp.int32, (chunk, 1), 0) if needs_mask else None

    def head_partials(ref, head_idx, vocab, w2):
        # col iota is loop-invariant for this head; hoist out of the chunk loop.
        col = lax.broadcasted_iota(jnp.int32, (chunk, vocab), 1)

        def body(c, carry):
            num_acc, den_acc = carry
            off = pl.multiple_of(c * chunk, chunk)

            logits = ref[pl.ds(off, chunk), :].astype(jnp.float32)       # (chunk, V)
            y = y_ref[pl.ds(off, chunk), head_idx:head_idx + 1]          # (chunk, 1) i32

            # logit[y] selected from raw logits (so `shifted` dies inside exp)
            m = jnp.max(logits, axis=-1, keepdims=True)                  # (chunk, 1)
            logit_y = jnp.sum(jnp.where(col == y, logits, 0.0),
                              axis=-1, keepdims=True)                    # (chunk, 1)
            s = jnp.sum(jnp.exp(logits - m), axis=-1, keepdims=True)     # (chunk, 1)
            nll = (jnp.log(s) + m) - logit_y                             # (chunk, 1)

            # per-token class weight from compile-time constants (no weight DMA)
            if w2 == 1.0:
                w_y = jnp.where(y == 1, _W_CLASS1, 1.0)
            else:
                w_y = jnp.where(y == 1, _W_CLASS1,
                                jnp.where(y == 2, w2, 1.0))

            if needs_mask:
                # NOTE: garbage rows of the padded last block may be NaN/Inf,
                # so mask with where (never multiply-by-mask: NaN*0 == NaN).
                valid = (base + off + row0) < n_tok
                num_c = jnp.sum(jnp.where(valid, w_y * nll, 0.0))
                den_c = jnp.sum(jnp.where(valid, w_y, 0.0))
            else:
                num_c = jnp.sum(w_y * nll)
                den_c = jnp.sum(w_y)
            return num_acc + num_c, den_acc + den_c

        zero = jnp.float32(0.0)
        return lax.fori_loop(0, n_chunks, body, (zero, zero), unroll=unroll)

    nn_, dn_ = head_partials(n_ref, 0, VOCAB_N, _W_CLASS2_NV)
    nv_, dv_ = head_partials(v_ref, 1, VOCAB_V, _W_CLASS2_NV)
    nd_, dd_ = head_partials(d_ref, 2, VOCAB_D, 1.0)

    # single vreg-aligned (1, 8, 128) store; lane 0 is read back in JAX
    zero = jnp.float32(0.0)
    out_ref[...] = jnp.concatenate(
        [jnp.broadcast_to(x, (1, _LANES))
         for x in (nn_, nv_, nd_, dn_, dv_, dd_, zero, zero)], axis=0)[None]


def _criterion_pallas(n2d, v2d, d2d, yt):
    """n2d/v2d/d2d: (n_tok, V_k) logits (native dtype), yt: (n_tok, 3) i32."""
    n_tok = n2d.shape[0]

    if n_tok <= _CHUNK:
        tile = max(8, _round_up(n_tok, 8))
        chunk = tile
    else:
        # >= 2 grid steps whenever possible (keeps both v7x TensorCores busy),
        # capped so double-buffered inputs stay well inside scoped VMEM.
        tile = min(_MAX_TILE, _round_up(-(-n_tok // 2), _CHUNK))
        chunk = _CHUNK
    g = -(-n_tok // tile)   # cdiv

    kernel = functools.partial(_criterion_kernel, n_tok=n_tok, chunk=chunk)

    out = pl.pallas_call(
        kernel,
        grid=(g,),
        in_specs=[
            pl.BlockSpec((tile, VOCAB_N), lambda i: (i, 0)),
            pl.BlockSpec((tile, VOCAB_V), lambda i: (i, 0)),
            pl.BlockSpec((tile, VOCAB_D), lambda i: (i, 0)),
            pl.BlockSpec((tile, 3), lambda i: (i, 0)),
        ],
        out_specs=pl.BlockSpec((1, _NUM_ROWS, _LANES), lambda i: (i, 0, 0)),
        out_shape=jax.ShapeDtypeStruct((g, _NUM_ROWS, _LANES), jnp.float32),
        compiler_params=pltpu.CompilerParams(
            dimension_semantics=("parallel",),
            vmem_limit_bytes=32 * 1024 * 1024),
    )(n2d, v2d, d2d, yt)

    num = jnp.sum(out[:, 0:3, 0], axis=0)   # (3,) tree-summed in f32
    den = jnp.sum(out[:, 3:6, 0], axis=0)   # (3,)
    return num, den


# ----------------------------------------------------------------------------
# Criterion forward (mirrors the PyTorch module)
# ----------------------------------------------------------------------------
@jax.jit
def criterion_forward(n_logits, v_logits, d_logits, y):
    """n_logits: (B,T,92)  v_logits: (B,T,130)  d_logits: (B,T,203)  y: (B,3,T)."""
    b, t, _ = n_logits.shape
    n_tok = b * t

    # targets as one (tokens, 3) slab (single small DMA shared by all heads)
    yt = jnp.transpose(y, (0, 2, 1)).reshape(n_tok, 3).astype(jnp.int32)

    num, den = _criterion_pallas(
        n_logits.reshape(n_tok, VOCAB_N),      # native dtype, no wrapper cast
        v_logits.reshape(n_tok, VOCAB_V),
        d_logits.reshape(n_tok, VOCAB_D),
        yt)

    # NOTE: if every target is the ignored class, den==0 -> inf/nan (matches torch)
    losses = {
        "loss_notes": num[0] / den[0],
        "loss_velocity": num[1] / den[1],
        "loss_duration": num[2] / den[2],
    }
    loss = sum(LOSS_WEIGHTS[k] * losses[k] for k in losses)
    losses["loss"] = loss
    return loss, losses


# ----------------------------------------------------------------------------
# Pure-JAX reference (mirrors torch.nn.functional.cross_entropy semantics)
# ----------------------------------------------------------------------------
def _ref_wce(logits, targets, w):
    logp = jax.nn.log_softmax(logits.astype(jnp.float32), axis=-1)
    nll = -jnp.take_along_axis(logp, targets[:, None].astype(jnp.int32), axis=-1)[:, 0]
    wt = w[targets]
    return jnp.sum(wt * nll) / jnp.sum(wt)


def _ref_forward(n_logits, v_logits, d_logits, y):
    w_n, w_v, w_d = make_criterion_buffers()
    b, t, _ = n_logits.shape
    ln = _ref_wce(n_logits.reshape(b * t, VOCAB_N), y[:, 0].reshape(-1), w_n)
    lv = _ref_wce(v_logits.reshape(b * t, VOCAB_V), y[:, 1].reshape(-1), w_v)
    ld = _ref_wce(d_logits.reshape(b * t, VOCAB_D), y[:, 2].reshape(-1), w_d)
    return ln + lv + ld


def _make_inputs(key, b, t, dtype):
    kn, kv, kd, kyn, kyv, kyd = jax.random.split(key, 6)
    n_logits = jax.random.normal(kn, (b, t, VOCAB_N), jnp.float32).astype(dtype)
    v_logits = jax.random.normal(kv, (b, t, VOCAB_V), jnp.float32).astype(dtype)
    d_logits = jax.random.normal(kd, (b, t, VOCAB_D), jnp.float32).astype(dtype)
    y_n = jax.random.randint(kyn, (b, t), 0, VOCAB_N, jnp.int32)
    y_v = jax.random.randint(kyv, (b, t), 0, VOCAB_V, jnp.int32)
    y_d = jax.random.randint(kyd, (b, t), 0, VOCAB_D, jnp.int32)
    y = jnp.stack([y_n, y_v, y_d], axis=1)  # (B, 3, T)
    return n_logits, v_logits, d_logits, y


if __name__ == "__main__":
    key = jax.random.PRNGKey(0)
    k1, k2 = jax.random.split(key)

    # small case (single tile, no ragged rows, f32 logits)
    n_l, v_l, d_l, y = _make_inputs(k1, 2, 8, jnp.float32)
    loss, _ = criterion_forward(n_l, v_l, d_l, y)
    loss = jax.block_until_ready(loss)
    ref = jax.block_until_ready(_ref_forward(n_l, v_l, d_l, y))
    np.testing.assert_allclose(np.asarray(loss), np.asarray(ref), rtol=1e-5, atol=1e-5)

    # ragged, multi-tile, multi-chunk case with bf16 logits
    # (n_tok=140 -> tile=128, g=2, chunk=64: exercises masking + native bf16 path)
    n_l, v_l, d_l, y = _make_inputs(k2, 2, 70, jnp.bfloat16)
    loss2, _ = criterion_forward(n_l, v_l, d_l, y)
    loss2 = jax.block_until_ready(loss2)
    ref2 = jax.block_until_ready(_ref_forward(n_l, v_l, d_l, y))
    np.testing.assert_allclose(np.asarray(loss2), np.asarray(ref2), rtol=1e-4, atol=1e-4)

    print("KERNEL_OK")
</pallas_src>

<mosaic_0001>
module attributes {stable_mosaic.version = 11 : i64} {
  func.func @_criterion_kernel(%arg0: i32, %arg1: memref<16x92xf32, #tpu.memory_space<vmem>>, %arg2: memref<16x130xf32, #tpu.memory_space<vmem>>, %arg3: memref<16x203xf32, #tpu.memory_space<vmem>>, %arg4: memref<16x3xi32, #tpu.memory_space<vmem>>, %arg5: memref<1x8x128xf32, #tpu.memory_space<vmem>>) attributes {dimension_semantics = [#tpu.dimension_semantics<parallel>], iteration_bounds = array<i64: 1>, scalar_prefetch = 0 : i64, scratch_operands = 0 : i64, tpu.core_type = #tpu.core_type<tc>, window_params = [{transform_indices = @transform_0, window_bounds = array<i64: 16, 92>}, {transform_indices = @transform_1, window_bounds = array<i64: 16, 130>}, {transform_indices = @transform_2, window_bounds = array<i64: 16, 203>}, {transform_indices = @transform_3, window_bounds = array<i64: 16, 3>}, {transform_indices = @transform_4, window_bounds = array<i64: 1, 8, 128>}]} {
    %0 = tpu.iota {dimensions = array<i32: 1>} : vector<16x92xi32>
    %cst = arith.constant 0.000000e+00 : f32
    %cst_0 = arith.constant 0.000000e+00 : f32
    %c0_i32 = arith.constant 0 : i32
    %c16_i32 = arith.constant 16 : i32
    %1 = arith.muli %c0_i32, %c16_i32 : i32
    %2 = tpu.assume_multiple %1, 16 : i32
    %3 = arith.index_cast %2 : i32 to index
    %c0 = arith.constant 0 : index
    %4 = vector.load %arg1[%3, %c0] : memref<16x92xf32, #tpu.memory_space<vmem>>, vector<16x92xf32>
    %5 = arith.index_cast %2 : i32 to index
    %c0_1 = arith.constant 0 : index
    %6 = vector.load %arg4[%5, %c0_1] : memref<16x3xi32, #tpu.memory_space<vmem>>, vector<16x1xi32>
    %cst_2 = arith.constant dense<0xFF800000> : vector<16xf32>
    %7 = vector.multi_reduction <maximumf>, %4, %cst_2 [1] : vector<16x92xf32> to vector<16xf32>
    %8 = vector.shape_cast %7 : vector<16xf32> to vector<16x1xf32>
    %9 = vector.broadcast %6 : vector<16x1xi32> to vector<16x92xi32>
    %10 = arith.cmpi eq, %0, %9 : vector<16x92xi32>
    %cst_3 = arith.constant 0.000000e+00 : f32
    %11 = vector.broadcast %cst_3 : f32 to vector<16x92xf32>
    %12 = arith.select %10, %4, %11 : vector<16x92xi1>, vector<16x92xf32>
    %cst_4 = arith.constant dense<0.000000e+00> : vector<16xf32>
    %13 = vector.multi_reduction <add>, %12, %cst_4 [1] : vector<16x92xf32> to vector<16xf32>
    %14 = vector.shape_cast %13 : vector<16xf32> to vector<16x1xf32>
    %15 = vector.broadcast %8 : vector<16x1xf32> to vector<16x92xf32>
    %16 = arith.subf %4, %15 : vector<16x92xf32>
    %17 = math.exp %16 : vector<16x92xf32>
    %cst_5 = arith.constant dense<0.000000e+00> : vector<16xf32>
    %18 = vector.multi_reduction <add>, %17, %cst_5 [1] : vector<16x92xf32> to vector<16xf32>
    %19 = vector.shape_cast %18 : vector<16xf32> to vector<16x1xf32>
    %20 = math.log %19 : vector<16x1xf32>
    %21 = arith.addf %20, %8 : vector<16x1xf32>
    %22 = arith.subf %21, %14 : vector<16x1xf32>
    %c1_i32 = arith.constant 1 : i32
    %23 = vector.broadcast %c1_i32 : i32 to vector<16x1xi32>
    %24 = arith.cmpi eq, %6, %23 : vector<16x1xi32>
    %c2_i32 = arith.constant 2 : i32
    %25 = vector.broadcast %c2_i32 : i32 to vector<16x1xi32>
    %26 = arith.cmpi eq, %6, %25 : vector<16x1xi32>
    %cst_6 = arith.constant 5.000000e-02 : f32
    %cst_7 = arith.constant 1.000000e+00 : f32
    %27 = vector.broadcast %cst_6 : f32 to vector<16x1xf32>
    %28 = vector.broadcast %cst_7 : f32 to vector<16x1xf32>
    %29 = arith.select %26, %27, %28 : vector<16x1xi1>, vector<16x1xf32>
    %cst_8 = arith.constant 0.000000e+00 : f32
    %30 = vector.broadcast %cst_8 : f32 to vector<16x1xf32>
    %31 = arith.select %24, %30, %29 : vector<16x1xi1>, vector<16x1xf32>
    %32 = arith.mulf %31, %22 : vector<16x1xf32>
    %33 = vector.shape_cast %32 : vector<16x1xf32> to vector<1x16x1xf32>
    %cst_9 = arith.constant dense<0.000000e+00> : vector<1xf32>
    %34 = vector.multi_reduction <add>, %33, %cst_9 [1, 2] : vector<1x16x1xf32> to vector<1xf32>
    %35 = vector.shape_cast %34 : vector<1xf32> to vector<1x1x1xf32>
    %36 = vector.extract %35[0, 0, 0] : f32 from vector<1x1x1xf32>
    %37 = vector.shape_cast %31 : vector<16x1xf32> to vector<1x16x1xf32>
    %cst_10 = arith.constant dense<0.000000e+00> : vector<1xf32>
    %38 = vector.multi_reduction <add>, %37, %cst_10 [1, 2] : vector<1x16x1xf32> to vector<1xf32>
    %39 = vector.shape_cast %38 : vector<1xf32> to vector<1x1x1xf32>
    %40 = vector.extract %39[0, 0, 0] : f32 from vector<1x1x1xf32>
    %41 = arith.addf %cst, %36 : f32
    %42 = arith.addf %cst_0, %40 : f32
    %c1_i32_11 = arith.constant 1 : i32
    %43 = tpu.iota {dimensions = array<i32: 1>} : vector<16x130xi32>
    %cst_12 = arith.constant 0.000000e+00 : f32
    %cst_13 = arith.constant 0.000000e+00 : f32
    %c0_i32_14 = arith.constant 0 : i32
    %c16_i32_15 = arith.constant 16 : i32
    %44 = arith.muli %c0_i32_14, %c16_i32_15 : i32
    %45 = tpu.assume_multiple %44, 16 : i32
    %46 = arith.index_cast %45 : i32 to index
    %c0_16 = arith.constant 0 : index
    %47 = vector.load %arg2[%46, %c0_16] : memref<16x130xf32, #tpu.memory_space<vmem>>, vector<16x130xf32>
    %48 = arith.index_cast %45 : i32 to index
    %c1 = arith.constant 1 : index
    %49 = vector.load %arg4[%48, %c1] : memref<16x3xi32, #tpu.memory_space<vmem>>, vector<16x1xi32>
    %cst_17 = arith.constant dense<0xFF800000> : vector<16xf32>
    %50 = vector.multi_reduction <maximumf>, %47, %cst_17 [1] : vector<16x130xf32> to vector<16xf32>
    %51 = vector.shape_cast %50 : vector<16xf32> to vector<16x1xf32>
    %52 = vector.broadcast %49 : vector<16x1xi32> to vector<16x130xi32>
    %53 = arith.cmpi eq, %43, %52 : vector<16x130xi32>
    %cst_18 = arith.constant 0.000000e+00 : f32
    %54 = vector.broadcast %cst_18 : f32 to vector<16x130xf32>
    %55 = arith.select %53, %47, %54 : vector<16x130xi1>, vector<16x130xf32>
    %cst_19 = arith.constant dense<0.000000e+00> : vector<16xf32>
    %56 = vector.multi_reduction <add>, %55, %cst_19 [1] : vector<16x130xf32> to vector<16xf32>
    %57 = vector.shape_cast %56 : vector<16xf32> to vector<16x1xf32>
    %58 = vector.broadcast %51 : vector<16x1xf32> to vector<16x130xf32>
    %59 = arith.subf %47, %58 : vector<16x130xf32>
    %60 = math.exp %59 : vector<16x130xf32>
    %cst_20 = arith.constant dense<0.000000e+00> : vector<16xf32>
    %61 = vector.multi_reduction <add>, %60, %cst_20 [1] : vector<16x130xf32> to vector<16xf32>
    %62 = vector.shape_cast %61 : vector<16xf32> to vector<16x1xf32>
    %63 = math.log %62 : vector<16x1xf32>
    %64 = arith.addf %63, %51 : vector<16x1xf32>
    %65 = arith.subf %64, %57 : vector<16x1xf32>
    %c1_i32_21 = arith.constant 1 : i32
    %66 = vector.broadcast %c1_i32_21 : i32 to vector<16x1xi32>
    %67 = arith.cmpi eq, %49, %66 : vector<16x1xi32>
    %c2_i32_22 = arith.constant 2 : i32
    %68 = vector.broadcast %c2_i32_22 : i32 to vector<16x1xi32>
    %69 = arith.cmpi eq, %49, %68 : vector<16x1xi32>
    %cst_23 = arith.constant 5.000000e-02 : f32
    %cst_24 = arith.constant 1.000000e+00 : f32
    %70 = vector.broadcast %cst_23 : f32 to vector<16x1xf32>
    %71 = vector.broadcast %cst_24 : f32 to vector<16x1xf32>
    %72 = arith.select %69, %70, %71 : vector<16x1xi1>, vector<16x1xf32>
    %cst_25 = arith.constant 0.000000e+00 : f32
    %73 = vector.broadcast %cst_25 : f32 to vector<16x1xf32>
    %74 = arith.select %67, %73, %72 : vector<16x1xi1>, vector<16x1xf32>
    %75 = arith.mulf %74, %65 : vector<16x1xf32>
    %76 = vector.shape_cast %75 : vector<16x1xf32> to vector<1x16x1xf32>
    %cst_26 = arith.constant dense<0.000000e+00> : vector<1xf32>
    %77 = vector.multi_reduction <add>, %76, %cst_26 [1, 2] : vector<1x16x1xf32> to vector<1xf32>
    %78 = vector.shape_cast %77 : vector<1xf32> to vector<1x1x1xf32>
    %79 = vector.extract %78[0, 0, 0] : f32 from vector<1x1x1xf32>
    %80 = vector.shape_cast %74 : vector<16x1xf32> to vector<1x16x1xf32>
    %cst_27 = arith.constant dense<0.000000e+00> : vector<1xf32>
    %81 = vector.multi_reduction <add>, %80, %cst_27 [1, 2] : vector<1x16x1xf32> to vector<1xf32>
    %82 = vector.shape_cast %81 : vector<1xf32> to vector<1x1x1xf32>
    %83 = vector.extract %82[0, 0, 0] : f32 from vector<1x1x1xf32>
    %84 = arith.addf %cst_12, %79 : f32
    %85 = arith.addf %cst_13, %83 : f32
    %c1_i32_28 = arith.constant 1 : i32
    %86 = tpu.iota {dimensions = array<i32: 1>} : vector<16x203xi32>
    %cst_29 = arith.constant 0.000000e+00 : f32
    %cst_30 = arith.constant 0.000000e+00 : f32
    %c0_i32_31 = arith.constant 0 : i32
    %c16_i32_32 = arith.constant 16 : i32
    %87 = arith.muli %c0_i32_31, %c16_i32_32 : i32
    %88 = tpu.assume_multiple %87, 16 : i32
    %89 = arith.index_cast %88 : i32 to index
    %c0_33 = arith.constant 0 : index
    %90 = vector.load %arg3[%89, %c0_33] : memref<16x203xf32, #tpu.memory_space<vmem>>, vector<16x203xf32>
    %91 = arith.index_cast %88 : i32 to index
    %c2 = arith.constant 2 : index
    %92 = vector.load %arg4[%91, %c2] : memref<16x3xi32, #tpu.memory_space<vmem>>, vector<16x1xi32>
    %cst_34 = arith.constant dense<0xFF800000> : vector<16xf32>
    %93 = vector.multi_reduction <maximumf>, %90, %cst_34 [1] : vector<16x203xf32> to vector<16xf32>
    %94 = vector.shape_cast %93 : vector<16xf32> to vector<16x1xf32>
    %95 = vector.broadcast %92 : vector<16x1xi32> to vector<16x203xi32>
    %96 = arith.cmpi eq, %86, %95 : vector<16x203xi32>
    %cst_35 = arith.constant 0.000000e+00 : f32
    %97 = vector.broadcast %cst_35 : f32 to vector<16x203xf32>
    %98 = arith.select %96, %90, %97 : vector<16x203xi1>, vector<16x203xf32>
    %cst_36 = arith.constant dense<0.000000e+00> : vector<16xf32>
    %99 = vector.multi_reduction <add>, %98, %cst_36 [1] : vector<16x203xf32> to vector<16xf32>
    %100 = vector.shape_cast %99 : vector<16xf32> to vector<16x1xf32>
    %101 = vector.broadcast %94 : vector<16x1xf32> to vector<16x203xf32>
    %102 = arith.subf %90, %101 : vector<16x203xf32>
    %103 = math.exp %102 : vector<16x203xf32>
    %cst_37 = arith.constant dense<0.000000e+00> : vector<16xf32>
    %104 = vector.multi_reduction <add>, %103, %cst_37 [1] : vector<16x203xf32> to vector<16xf32>
    %105 = vector.shape_cast %104 : vector<16xf32> to vector<16x1xf32>
    %106 = math.log %105 : vector<16x1xf32>
    %107 = arith.addf %106, %94 : vector<16x1xf32>
    %108 = arith.subf %107, %100 : vector<16x1xf32>
    %c1_i32_38 = arith.constant 1 : i32
    %109 = vector.broadcast %c1_i32_38 : i32 to vector<16x1xi32>
    %110 = arith.cmpi eq, %92, %109 : vector<16x1xi32>
    %cst_39 = arith.constant 0.000000e+00 : f32
    %cst_40 = arith.constant 1.000000e+00 : f32
    %111 = vector.broadcast %cst_39 : f32 to vector<16x1xf32>
    %112 = vector.broadcast %cst_40 : f32 to vector<16x1xf32>
    %113 = arith.select %110, %111, %112 : vector<16x1xi1>, vector<16x1xf32>
    %114 = arith.mulf %113, %108 : vector<16x1xf32>
    %115 = vector.shape_cast %114 : vector<16x1xf32> to vector<1x16x1xf32>
    %cst_41 = arith.constant dense<0.000000e+00> : vector<1xf32>
    %116 = vector.multi_reduction <add>, %115, %cst_41 [1, 2] : vector<1x16x1xf32> to vector<1xf32>
    %117 = vector.shape_cast %116 : vector<1xf32> to vector<1x1x1xf32>
    %118 = vector.extract %117[0, 0, 0] : f32 from vector<1x1x1xf32>
    %119 = vector.shape_cast %113 : vector<16x1xf32> to vector<1x16x1xf32>
    %cst_42 = arith.constant dense<0.000000e+00> : vector<1xf32>
    %120 = vector.multi_reduction <add>, %119, %cst_42 [1, 2] : vector<1x16x1xf32> to vector<1xf32>
    %121 = vector.shape_cast %120 : vector<1xf32> to vector<1x1x1xf32>
    %122 = vector.extract %121[0, 0, 0] : f32 from vector<1x1x1xf32>
    %123 = arith.addf %cst_29, %118 : f32
    %124 = arith.addf %cst_30, %122 : f32
    %c1_i32_43 = arith.constant 1 : i32
    %125 = vector.broadcast %41 : f32 to vector<1x128xf32>
    %126 = vector.broadcast %84 : f32 to vector<1x128xf32>
    %127 = vector.broadcast %123 : f32 to vector<1x128xf32>
    %128 = vector.broadcast %42 : f32 to vector<1x128xf32>
    %129 = vector.broadcast %85 : f32 to vector<1x128xf32>
    %130 = vector.broadcast %124 : f32 to vector<1x128xf32>
    %cst_44 = arith.constant 0.000000e+00 : f32
    %131 = vector.broadcast %cst_44 : f32 to vector<1x128xf32>
    %cst_45 = arith.constant 0.000000e+00 : f32
    %132 = vector.broadcast %cst_45 : f32 to vector<1x128xf32>
    %133 = tpu.concatenate %125, %126, %127, %128, %129, %130, %131, %132 in 0 : vector<1x128xf32>, vector<1x128xf32>, vector<1x128xf32>, vector<1x128xf32>, vector<1x128xf32>, vector<1x128xf32>, vector<1x128xf32>, vector<1x128xf32> -> vector<8x128xf32>
    %134 = vector.shape_cast %133 : vector<8x128xf32> to vector<1x8x128xf32>
    %c0_46 = arith.constant 0 : index
    %c0_47 = arith.constant 0 : index
    %c0_48 = arith.constant 0 : index
    %135 = vector.load %arg5[%c0_46, %c0_47, %c0_48] : memref<1x8x128xf32, #tpu.memory_space<vmem>>, vector<1x8x128xf32>
    tpu.vector_store %arg5[%c0_46, %c0_47, %c0_48], %134 {strides = array<i32>} : memref<1x8x128xf32, #tpu.memory_space<vmem>>, vector<1x8x128xf32>,
    return
  }
  func.func @transform_0(%arg0: i32) -> (i32, i32) {
    %c0_i32 = arith.constant 0 : i32
    %c0_i32_0 = arith.constant 0 : i32
    return %arg0, %c0_i32 : i32, i32
  }
  func.func @transform_1(%arg0: i32) -> (i32, i32) {
    %c0_i32 = arith.constant 0 : i32
    %c0_i32_0 = arith.constant 0 : i32
    return %arg0, %c0_i32 : i32, i32
  }
  func.func @transform_2(%arg0: i32) -> (i32, i32) {
    %c0_i32 = arith.constant 0 : i32
    %c0_i32_0 = arith.constant 0 : i32
    return %arg0, %c0_i32 : i32, i32
  }
  func.func @transform_3(%arg0: i32) -> (i32, i32) {
    %c0_i32 = arith.constant 0 : i32
    %c0_i32_0 = arith.constant 0 : i32
    return %arg0, %c0_i32 : i32, i32
  }
  func.func @transform_4(%arg0: i32) -> (i32, i32, i32) {
    %c0_i32 = arith.constant 0 : i32
    %c0_i32_0 = arith.constant 0 : i32
    %c0_i32_1 = arith.constant 0 : i32
    return %arg0, %c0_i32, %c0_i32_0 : i32, i32, i32
  }
}

</mosaic_0001>

<bundles_post_ra>
// kernel: criterion_forward.1
= control target key start
LH: loop header
LB: loop body
LE: loop exit
PB: predicated region body
PF: predicated region fallthrough
CT: control target
= control target key end

     0   :  { %9 = vsyncpa [#allocation3], 0  ;;  %s702_s0 = inlined_call_operand.vmem [shape: f32[16,92], index: 0, kind: input, shape index: {}]   ;;  %s703_s1 = inlined_call_operand.hbm [shape: f32[16,130], index: 1, kind: input, shape index: {}]   ;;  %s704_s2 = inlined_call_operand.hbm [shape: f32[16,203], index: 2, kind: input, shape index: {}]   ;;  %s705_s3 = inlined_call_operand.vmem [shape: s32[16,3], index: 3, kind: input, shape index: {}]   ;;  %s706_s4 = inlined_call_operand.vmem [shape: f32[1,8,128], index: 4, kind: output, shape index: {}]  }
   0x1   :  { %s17_s17 = sshll.u32 %s703_s1, 4  ;;  %s18_s17 = int_to_ptr.hbm [resolvable:$true] %s17_s17 }
   0x2   :  { %10 = vsyncpa [#allocation5], 0  ;;  %s500_s18 = smov [#allocation2]   ;;  %s30_s22 = sshll.u32 %s704_s2, 4  ;;  %s31_s22 = int_to_ptr.hbm [resolvable:$true] %s30_s22 }
   0x3   :  { %s19_s19 = sshll.u32 %s500_s18, 4  ;;  %s501_s23 = smov 256   ;;  %s20_s19 = int_to_ptr.vmem [resolvable:$true] %s19_s19 }
   0x4   :  { %s502_s24 = smov 16   ;;  %s503_s25 = smov [#allocation4]  }
   0x5   :  { %25 = dma.hbm_to_vmem [thread:$0]  %s18_s17, 512, %s20_s19, [#allocation3], %s501_s23, %s501_s23, %s502_s24  }
   0x6   :  { %s32_s26 = sshll.u32 %s503_s25, 4  ;;  %s33_s26 = int_to_ptr.vmem [resolvable:$true] %s32_s26 }
   0x7   :  { %38 = dma.hbm_to_vmem [thread:$0]  %s31_s22, 512, %s33_s26, [#allocation5], %s501_s23, %s501_s23, %s502_s24  }
   0x8   :  { %496 = dma.done.wait [#allocation3], 512  }
   0x9   :  { %497 = vsyncadd [#allocation3], 4294966784 }
   0xa   :  { %498 = dma.done.wait [#allocation5], 512  }
   0xb   :  { %499 = vsyncadd [#allocation5], 4294966784  ;;  %v504_v0 = vmov 1   ;;  %v505_v1 = vmov 2   ;;  %vm252_vm0 = vcmask 613376   ;;  %vm143_vm1 = vcmask 15360  }
   0xc   :  { %406 = vset.pattern.permute.xlu2 %v504_v0  ;;  %408 = vset.pattern.permute.xlu1 %v505_v1  ;;  %v544_v2 = vld [vmem:[%s705_s3] sm:$0xff]  ;;  %v548_v4 = vld [vmem:[#allocation4 + $0x8] sm:$0xff]  ;;  %v555_v10 = vld [vmem:[#allocation4 + $0x18] sm:$0xff]  ;;  %vm55_vm2 = vcmask 752640   ;;  %v506_v22 = vmov 0   ;;  %v49_v25 = vlaneseq  ;;  %s509_s6 = smov 126  }
   0xd   :  { %407 = vset.pattern.permute.xlu0 %v505_v1  ;;  %v546_v3 = vld [vmem:[#allocation4] sm:$0xff]  ;;  %153 = vperm.xlu2 %406, %v544_v2   ;;  %v253_v5 = vsel %vm252_vm0, %v548_v4, -inf  ;;  %v140_v7 = vld [vmem:[#allocation2 + $0x8] sm:$0xff]  ;;  %v557_v12 = vld [vmem:[#allocation2 + $0x18] sm:$0xff]  ;;  %v257_v14 = vsel %vm252_vm0, %v555_v10, -inf  ;;  %vm100_vm13 = vcmp.eq.s32.totalorder %v544_v2, 2 }
   0xe   :  { %v139_v6 = vld [vmem:[#allocation2] sm:$0xff]  ;;  %v254_v8 = vmax.f32 %v546_v3, %v253_v5  ;;  %v144_v9 = vsel %vm143_vm1, %v140_v7, -inf  ;;  %v559_v13 = vld [vmem:[#allocation4 + $0x10] sm:$0xff]  ;;  %v566_v15 = vld [vmem:[%s705_s3 + $0x8] sm:$0xff]  ;;  %v148_v17 = vsel %vm143_vm1, %v557_v12, -inf  ;;  %v592_v26 = vand.u32 127, %v49_v25 }
   0xf   :  { %v145_v11 = vmax.f32 %v139_v6, %v144_v9  ;;  %v568_v16 = vld [vmem:[#allocation2 + $0x10] sm:$0xff]  ;;  %v258_v18 = vmax.f32 %v559_v13, %v257_v14  ;;  %v580_v20 = vld [vmem:[%s702_s0] sm:$0xff]  ;;  %v587_v23 = vld [vmem:[%s702_s0 + $0x8] sm:$0xff]  ;;  %vm98_vm14 = vcmp.eq.s32.totalorder %v544_v2, 1  ;;  %s508_s0 = smov 127   ;;  %vm101_vm15 = vcmp.eq.s32.totalorder %v566_v15, 2 }
  0x10   :  { %255 = vmax.xlane.f32.xlu1 %v254_v8  ;;  %v149_v19 = vmax.f32 %v568_v16, %v148_v17  ;;  %v56_v21 = vsel %vm55_vm2, %v580_v20, -inf  ;;  %v59_v24 = vsel %vm55_vm2, %v587_v23, -inf  ;;  %v595_v27 = vadd.s32 128, %v592_v26 }
  0x11   :  { %146 = vmax.xlane.f32.xlu0 %v145_v11 }
  0x15   :  { %156 = vperm.xlu2 %406, %v566_v15  }
  0x18   :  { %259 = vmax.xlane.f32.xlu1 %v258_v18 }
  0x19   :  { %150 = vmax.xlane.f32.xlu0 %v149_v19 }
  0x1d   :  { %409 = vset.pattern.permute.xlu2 %v506_v22 }
  0x2d   :  { %262 = vperm.xlu0 %407, %v544_v2  }
  0x31   :  { %265 = vperm.xlu1 %408, %v566_v15  }
  0x39   :  { %410 = vset.pattern.permute.xlu1 %v506_v22 }
  0x3e   :  { %57 = vmax.xlane.f32.xlu2 %v56_v21 }
  0x56   :  { %63 = vperm.xlu2 %409, %v544_v2  }
  0x5b   :  { %60 = vmax.xlane.f32.xlu1 %v59_v24 }
  0x67   :  { %v154_v28 = vpop.permute.xlu2 %153 }
  0x68   :  { %vm158_vm3 = vcmp.eq.s32.totalorder %v592_v26, %v154_v28  ;;  %vm159_vm4 = vcmp.eq.s32.totalorder %v595_v27, %v154_v28 }
  0x69   :  { %v163_v29 = vsel %vm159_vm4, %v140_v7, 0.0  ;;  %v162_v30 = vsel %vm158_vm3, %v139_v6, 0.0  ;;  %vm365_vm3 = vcmask 1041408   ;;  %vm367_vm4 = vcmask 1042432  }
  0x6a   :  { %v166_v31 = vsel %vm143_vm1, %v163_v29, 0.0 }
  0x6b   :  { %v167_v32 = vadd.f32 %v166_v31, %v162_v30 }
  0x6d   :  { %168 = vadd.xlane.f32.xlu0 %v167_v32 }
  0x6f   :  { %v157_v18 = vpop.permute.xlu2 %156 }
  0x70   :  { %vm161_vm9 = vcmp.eq.s32.totalorder %v595_v27, %v157_v18  ;;  %vm160_vm10 = vcmp.eq.s32.totalorder %v592_v26, %v157_v18 }
  0x71   :  { %v165_v24 = vsel %vm161_vm9, %v557_v12, 0.0 }
  0x74   :  { %66 = vperm.xlu1 %410, %v566_v15  }
  0x83   :  { %v605_v38 = vpop.xlane.xlu1 %255 }
  0x84   :  { %v601_v33 = vpop.xlane.xlu0 %146  ;;  %v284_v42 = vsub.f32 %v548_v4, %v605_v38  ;;  %v283_v47 = vsub.f32 %v546_v3, %v605_v38 }
  0x85   :  { %v174_v34 = vsub.f32 %v139_v6, %v601_v33  ;;  %v175_v35 = vsub.f32 %v140_v7, %v601_v33 }
  0x86   :  { %v289_v49 = vmul.f32 1.442695, %v284_v42  ;;  %v287_v52 = vmul.f32 1.442695, %v283_v47 }
  0x87   :  { %v178_v36 = vmul.f32 1.442695, %v174_v34  ;;  %v180_v37 = vmul.f32 1.442695, %v175_v35 }
  0x89   :  { %416 = vpow2.f32 %v178_v36 }
  0x8a   :  { %418 = vpow2.f32 %v180_v37 }
  0x8b   :  { %v618_v51 = vpop.xlane.xlu1 %259 }
  0x8c   :  { %v607_v39 = vpop.xlane.xlu0 %150  ;;  %v286_v53 = vsub.f32 %v555_v10, %v618_v51  ;;  %v285_v56 = vsub.f32 %v559_v13, %v618_v51 }
  0x8d   :  { %v176_v40 = vsub.f32 %v568_v16, %v607_v39  ;;  %v177_v41 = vsub.f32 %v557_v12, %v607_v39 }
  0x8e   :  { %v293_v58 = vmul.f32 1.442695, %v286_v53  ;;  %v291_v61 = vmul.f32 1.442695, %v285_v56 }
  0x8f   :  { %v417_v43 = vpop.eup %416  ;;  %v182_v44 = vmul.f32 1.442695, %v176_v40  ;;  %v184_v45 = vmul.f32 1.442695, %v177_v41 }
  0x90   :  { %v419_v46 = vpop.eup %418 }
  0x91   :  { %420 = vpow2.f32 %v182_v44  ;;  %v186_v48 = vsel %vm143_vm1, %v419_v46, 0.0  ;;  %v507_v44 = vmov 1.0  }
  0x92   :  { %422 = vpow2.f32 %v184_v45  ;;  %v187_v50 = vadd.f32 %v417_v43, %v186_v48  ;;  %v102_v45 = vsel %vm100_vm13, 0.05, %v507_v44  ;;  %v311_v47 = vsel %vm98_vm14, 0.0, %v507_v44 }
  0x93   :  { %424 = vpow2.f32 %v289_v49  ;;  %v660_v46 = vsel %vm98_vm14, 0.0, %v102_v45 }
  0x94   :  { %188 = vadd.xlane.f32.xlu0 %v187_v50  ;;  %426 = vpow2.f32 %v287_v52 }
  0x95   :  { %428 = vpow2.f32 %v293_v58 }
  0x96   :  { %430 = vpow2.f32 %v291_v61 }
  0x97   :  { %v421_v54 = vpop.eup %420 }
  0x98   :  { %v423_v55 = vpop.eup %422 }
  0x99   :  { %v190_v57 = vsel %vm143_vm1, %v423_v55, 0.0  ;;  %v425_v60 = vpop.eup %424 }
  0x9a   :  { %v191_v59 = vadd.f32 %v421_v54, %v190_v57  ;;  %v427_v62 = vpop.eup %426  ;;  %v295_v63 = vsel %vm252_vm0, %v425_v60, 0.0 }
  0x9b   :  { %v296_v6 = vadd.f32 %v427_v62, %v295_v63  ;;  %v429_v11 = vpop.eup %428 }
  0x9c   :  { %192 = vadd.xlane.f32.xlu2 %v191_v59  ;;  %v299_v19 = vsel %vm252_vm0, %v429_v11, 0.0 }
  0x9f   :  { %v263_v0 = vpop.permute.xlu0 %262 }
  0xa0   :  { %vm267_vm5 = vcmp.eq.s32.totalorder %v592_v26, %v263_v0  ;;  %vm268_vm6 = vcmp.eq.s32.totalorder %v595_v27, %v263_v0 }
  0xa1   :  { %v272_v1 = vsel %vm268_vm6, %v548_v4, 0.0  ;;  %v271_v5 = vsel %vm267_vm5, %v546_v3, 0.0  ;;  %v431_v3 = vpop.eup %430  ;;  %vm369_vm5 = vcmask 1043456   ;;  %vm371_vm6 = vcmask 1044480  }
  0xa2   :  { %v275_v7 = vsel %vm252_vm0, %v272_v1, 0.0  ;;  %v300_v22 = vadd.f32 %v431_v3, %v299_v19 }
  0xa3   :  { %v276_v8 = vadd.f32 %v275_v7, %v271_v5  ;;  %v266_v9 = vpop.permute.xlu1 %265 }
  0xa4   :  { %297 = vadd.xlane.f32.xlu2 %v296_v6  ;;  %vm269_vm7 = vcmp.eq.s32.totalorder %v592_v26, %v266_v9  ;;  %vm270_vm8 = vcmp.eq.s32.totalorder %v595_v27, %v266_v9 }
  0xa5   :  { %277 = vadd.xlane.f32.xlu0 %v276_v8  ;;  %v274_v14 = vsel %vm270_vm8, %v555_v10, 0.0  ;;  %v273_v17 = vsel %vm269_vm7, %v559_v13, 0.0  ;;  %v164_v10 = vsel %vm160_vm10, %v568_v16, 0.0  ;;  %v170_v13 = vsel %vm143_vm1, %v165_v24, 0.0 }
  0xa6   :  { %v279_v4 = vsel %vm252_vm0, %v274_v14, 0.0  ;;  %v171_v29 = vadd.f32 %v170_v13, %v164_v10  ;;  %vm99_vm0 = vcmp.eq.s32.totalorder %v566_v15, 1  ;;  %vm108_vm1 = vcmask 7168  }
  0xa7   :  { %v280_v21 = vadd.f32 %v279_v4, %v273_v17  ;;  %v312_v48 = vsel %vm99_vm0, 0.0, %v507_v44  ;;  %vm373_vm7 = vcmask 1045504   ;;  %vm375_vm8 = vcmask 1046528  }
  0xa8   :  { %v411_v49 = vpack.i.bf16 %v312_v48, %v311_v47 }
  0xa9   :  { %281 = vadd.xlane.f32.xlu1 %v280_v21 }
  0xac   :  { %301 = vadd.xlane.f32.xlu2 %v300_v22 }
  0xb1   :  { %v642_v25 = vpop.xlane.xlu2 %57 }
  0xb2   :  { %v78_v28 = vsub.f32 %v580_v20, %v642_v25 }
  0xb4   :  { %v80_v30 = vmul.f32 1.442695, %v78_v28  ;;  %172 = vadd.xlane.f32.xlu2 %v171_v29 }
  0xb6   :  { %432 = vpow2.f32 %v80_v30 }
  0xb9   :  { %v64_v35 = vpop.permute.xlu2 %63 }
  0xba   :  { %vm68_vm11 = vcmp.eq.s32.totalorder %v592_v26, %v64_v35 }
  0xbb   :  { %v70_v37 = vsel %vm68_vm11, %v580_v20, 0.0  ;;  %v103_v20 = vsel %vm101_vm15, 0.05, %v507_v44 }
  0xbc   :  { %v433_v27 = vpop.eup %432  ;;  %v72_v40 = vsel %vm55_vm2, %v70_v37, 0.0 }
  0xbd   :  { %v84_v31 = vsel %vm55_vm2, %v433_v27, 0.0 }
  0xbe   :  { %85 = vadd.xlane.f32.xlu0 %v84_v31 }
  0xc2   :  { %226 = vrot.lane.b32.xlu1 %v660_v46, %s508_s0 }
  0xca   :  { %412 = vrot.lane.b32.xlu1 %v411_v49, %s509_s6 }
  0xce   :  { %v647_v32 = vpop.xlane.xlu1 %60 }
  0xcf   :  { %v79_v12 = vsub.f32 %v587_v23, %v647_v32 }
  0xd1   :  { %v82_v16 = vmul.f32 1.442695, %v79_v12 }
  0xd3   :  { %434 = vpow2.f32 %v82_v16  ;;  %v121_v16 = vsel %vm108_vm1, %v660_v46, 0.0 }
  0xd9   :  { %v435_v34 = vpop.eup %434 }
  0xda   :  { %v87_v36 = vsel %vm55_vm2, %v435_v34, 0.0 }
  0xdb   :  { %88 = vadd.xlane.f32.xlu0 %v87_v36 }
  0xe3   :  { %73 = vadd.xlane.f32.xlu0 %v72_v40 }
  0xe6   :  { %v67_v41 = vpop.permute.xlu1 %66 }
  0xe7   :  { %vm69_vm12 = vcmp.eq.s32.totalorder %v592_v26, %v67_v41  ;;  %v169_v26 = vpop.xlane.xlu0 %168 }
  0xe8   :  { %v71_v42 = vsel %vm69_vm12, %v587_v23, 0.0  ;;  %v666_v23 = vsel %vm99_vm0, 0.0, %v103_v20 }
  0xe9   :  { %v75_v43 = vsel %vm55_vm2, %v71_v42, 0.0  ;;  %vm363_vm2 = vcmask 1040384  }
  0xeb   :  { %76 = vadd.xlane.f32.xlu0 %v75_v43 }
  0xff   :  { %228 = vrot.lane.b32.xlu0 %v666_v23, %s508_s0 }
 0x107   :  { %v189_v2 = vpop.xlane.xlu0 %188 }
 0x108   :  { %436 = vlog2.f32 %v189_v2 }
 0x10e   :  { %v437_v50 = vpop.eup %436 }
 0x10f   :  { %v195_v52 = vmul.f32 0.6931472, %v437_v50  ;;  %v193_v53 = vpop.xlane.xlu2 %192 }
 0x110   :  { %438 = vlog2.f32 %v193_v53 }
 0x111   :  { %v198_v15 = vadd.f32 %v195_v52, %v601_v33 }
 0x113   :  { %v200_v54 = vsub.f32 %v198_v15, %v169_v26 }
 0x115   :  { %v202_v55 = vmul.f32 %v200_v54, %v660_v46 }
 0x116   :  { %v439_v57 = vpop.eup %438 }
 0x117   :  { %206 = vrot.lane.b32.xlu0 %v202_v55, %s508_s0  ;;  %v298_v56 = vpop.xlane.xlu2 %297  ;;  %v197_v59 = vmul.f32 0.6931472, %v439_v57 }
 0x118   :  { %440 = vlog2.f32 %v298_v56  ;;  %v278_v9 = vpop.xlane.xlu0 %277 }
 0x119   :  { %v199_v63 = vadd.f32 %v197_v59, %v607_v39 }
 0x11c   :  { %v282_v5 = vpop.xlane.xlu1 %281 }
 0x11e   :  { %v441_v60 = vpop.eup %440 }
 0x11f   :  { %v302_v58 = vpop.xlane.xlu2 %301  ;;  %v304_v62 = vmul.f32 0.6931472, %v441_v60 }
 0x120   :  { %442 = vlog2.f32 %v302_v58 }
 0x121   :  { %v307_v7 = vadd.f32 %v304_v62, %v605_v38 }
 0x123   :  { %v309_v17 = vsub.f32 %v307_v7, %v278_v9 }
 0x125   :  { %v313_v18 = vmul.f32 %v311_v47, %v309_v17 }
 0x126   :  { %v443_v61 = vpop.eup %442 }
 0x127   :  { %v306_v0 = vmul.f32 0.6931472, %v443_v61  ;;  %v173_v1 = vpop.xlane.xlu2 %172 }
 0x128   :  { %v201_v33 = vsub.f32 %v199_v63, %v173_v1 }
 0x129   :  { %v308_v6 = vadd.f32 %v306_v0, %v618_v51 }
 0x12a   :  { %v203_v8 = vmul.f32 %v201_v33, %v666_v23 }
 0x12b   :  { %v310_v11 = vsub.f32 %v308_v6, %v282_v5 }
 0x12c   :  { %208 = vrot.lane.b32.xlu2 %v203_v8, %s508_s0 }
 0x12d   :  { %v314_v14 = vmul.f32 %v312_v48, %v310_v11 }
 0x12f   :  { %319 = vrot.lane.b32.xlu0 %v314_v14, %s509_s6 }
 0x131   :  { %v86_v39 = vpop.xlane.xlu0 %85 }
 0x132   :  { %444 = vlog2.f32 %v86_v39 }
 0x134   :  { %317 = vrot.lane.b32.xlu2 %v313_v18, %s509_s6  ;;  %v227_v34 = vpop.permute.xlu1 %226 }
 0x135   :  { %v232_v35 = vsel %vm108_vm1, %v227_v34, 0.0 }
 0x138   :  { %v445_v51 = vpop.eup %444 }
 0x139   :  { %v91_v3 = vmul.f32 0.6931472, %v445_v51 }
 0x13b   :  { %v94_v22 = vadd.f32 %v91_v3, %v642_v25  ;;  %v122_v25 = vsel %vm108_vm1, %v666_v23, 0.0 }
 0x13c   :  { %v413_v42 = vpop.permute.xlu1 %412 }
 0x13d   :  { %v414_v20 = vunpack.i.l.bf16 %v413_v42 }
 0x13f   :  { %v343_v26 = vsel %vm108_vm1, %v414_v20, 0.0 }
 0x14e   :  { %v89_v4 = vpop.xlane.xlu0 %88 }
 0x14f   :  { %446 = vlog2.f32 %v89_v4 }
 0x155   :  { %v447_v38 = vpop.eup %446 }
 0x156   :  { %v74_v19 = vpop.xlane.xlu0 %73  ;;  %v93_v21 = vmul.f32 0.6931472, %v447_v38 }
 0x157   :  { %v96_v24 = vsub.f32 %v94_v22, %v74_v19 }
 0x158   :  { %v95_v10 = vadd.f32 %v93_v21, %v647_v32  ;;  %v123_v32 = vadd.f32 %v122_v25, %v121_v16 }
 0x159   :  { %v106_v28 = vmul.f32 %v660_v46, %v96_v24  ;;  %v415_v46 = vunpack.i.h.bf16 %v413_v42 }
 0x15a   :  { %124 = vadd.xlane.f32.xlu0 %v123_v32 }
 0x15b   :  { %v109_v27 = vsel %vm108_vm1, %v106_v28, 0.0  ;;  %v344_v2 = vsel %vm108_vm1, %v415_v46, 0.0 }
 0x15c   :  { %v345_v47 = vadd.f32 %v344_v2, %v343_v26 }
 0x15e   :  { %v77_v13 = vpop.xlane.xlu0 %76 }
 0x15f   :  { %v97_v29 = vsub.f32 %v95_v10, %v77_v13 }
 0x161   :  { %v107_v30 = vmul.f32 %v666_v23, %v97_v29 }
 0x163   :  { %v110_v31 = vsel %vm108_vm1, %v107_v30, 0.0 }
 0x164   :  { %v111_v12 = vadd.f32 %v110_v31, %v109_v27 }
 0x166   :  { %112 = vadd.xlane.f32.xlu2 %v111_v12 }
 0x171   :  { %v229_v36 = vpop.permute.xlu0 %228 }
 0x172   :  { %v233_v37 = vsel %vm108_vm1, %v229_v36, 0.0 }
 0x173   :  { %v234_v40 = vadd.f32 %v233_v37, %v232_v35 }
 0x175   :  { %235 = vadd.xlane.f32.xlu2 %v234_v40 }
 0x186   :  { %v209_v41 = vpop.permute.xlu2 %208 }
 0x187   :  { %v213_v44 = vsel %vm108_vm1, %v209_v41, 0.0 }
 0x189   :  { %v207_v43 = vpop.permute.xlu0 %206 }
 0x18a   :  { %v212_v45 = vsel %vm108_vm1, %v207_v43, 0.0 }
 0x18b   :  { %v214_v23 = vadd.f32 %v213_v44, %v212_v45 }
 0x18d   :  { %215 = vadd.xlane.f32.xlu1 %v214_v23 }
 0x18e   :  { %v318_v48 = vpop.permute.xlu2 %317 }
 0x18f   :  { %v323_v50 = vsel %vm108_vm1, %v318_v48, 0.0 }
 0x195   :  { %346 = vadd.xlane.f32.xlu1 %v345_v47 }
 0x1a1   :  { %v320_v49 = vpop.permute.xlu0 %319 }
 0x1a2   :  { %v324_v52 = vsel %vm108_vm1, %v320_v49, 0.0 }
 0x1a3   :  { %v325_v53 = vadd.f32 %v324_v52, %v323_v50 }
 0x1a5   :  { %326 = vadd.xlane.f32.xlu0 %v325_v53 }
 0x1cd   :  { %v125_v58 = vpop.xlane.xlu0 %124 }
 0x1ce   :  { %v126_v59 = vrot.slane %v125_v58, 4 }
 0x1d0   :  { %v127_v61 = vadd.f32 %v126_v59, %v125_v58 }
 0x1d2   :  { %v128_v63 = vrot.slane %v127_v61, 2 }
 0x1d4   :  { %v129_v0 = vadd.f32 %v128_v63, %v127_v61 }
 0x1d6   :  { %v130_v1 = vrot.slane %v129_v0, 1 }
 0x1d8   :  { %v131_v33 = vadd.f32 %v130_v1, %v129_v0 }
 0x1d9   :  { %v113_v15 = vpop.xlane.xlu2 %112 }
 0x1da   :  { %v114_v54 = vrot.slane %v113_v15, 4 }
 0x1dc   :  { %v115_v55 = vadd.f32 %v114_v54, %v113_v15 }
 0x1de   :  { %v116_v56 = vrot.slane %v115_v55, 2 }
 0x1e0   :  { %v117_v57 = vadd.f32 %v116_v56, %v115_v55 }
 0x1e2   :  { %v118_v60 = vrot.slane %v117_v57, 1 }
 0x1e4   :  { %v119_v62 = vadd.f32 %v118_v60, %v117_v57 }
 0x1e6   :  { %384 = vpush %v119_v62 }
 0x1e7   :  { %386 = vpush %v131_v33 }
 0x1e8   :  { %v236_v5 = vpop.xlane.xlu2 %235 }
 0x1e9   :  { %v237_v6 = vrot.slane %v236_v5, 4 }
 0x1eb   :  { %v238_v7 = vadd.f32 %v237_v6, %v236_v5 }
 0x1ed   :  { %v239_v8 = vrot.slane %v238_v7, 2 }
 0x1ef   :  { %v240_v14 = vadd.f32 %v239_v8, %v238_v7 }
 0x1f1   :  { %v241_v39 = vrot.slane %v240_v14, 1 }
 0x1f3   :  { %v242_v3 = vadd.f32 %v241_v39, %v240_v14 }
 0x200   :  { %v216_v9 = vpop.xlane.xlu1 %215 }
 0x201   :  { %v217_v11 = vrot.slane %v216_v9, 4 }
 0x203   :  { %v218_v17 = vadd.f32 %v217_v11, %v216_v9 }
 0x205   :  { %v219_v18 = vrot.slane %v218_v17, 2 }
 0x207   :  { %v220_v4 = vadd.f32 %v219_v18, %v218_v17 }
 0x208   :  { %v347_v19 = vpop.xlane.xlu1 %346 }
 0x209   :  { %v221_v51 = vrot.slane %v220_v4, 1  ;;  %v348_v21 = vrot.slane %v347_v19, 4 }
 0x20b   :  { %v222_v38 = vadd.f32 %v221_v51, %v220_v4  ;;  %v349_v22 = vadd.f32 %v348_v21, %v347_v19 }
 0x20d   :  { %388 = vpush %v222_v38  ;;  %v350_v24 = vrot.slane %v349_v22, 2 }
 0x20e   :  { %390 = vpush %v242_v3 }
 0x20f   :  { %v351_v29 = vadd.f32 %v350_v24, %v349_v22 }
 0x211   :  { %v352_v31 = vrot.slane %v351_v29, 1 }
 0x213   :  { %v353_v25 = vadd.f32 %v352_v31, %v351_v29 }
 0x217   :  { %s385_s7 = spop %384 }
 0x218   :  { %v327_v10 = vpop.xlane.xlu0 %326  ;;  %s387_s8 = spop %386  ;;  %v357_v34 = vstv %s385_s7 }
 0x219   :  { %v328_v13 = vrot.slane %v327_v10, 4  ;;  %v360_v37 = vstv %s387_s8 }
 0x21b   :  { %v329_v28 = vadd.f32 %v328_v13, %v327_v10 }
 0x21d   :  { %v330_v30 = vrot.slane %v329_v28, 2 }
 0x21f   :  { %v331_v27 = vadd.f32 %v330_v30, %v329_v28 }
 0x221   :  { %v332_v12 = vrot.slane %v331_v27, 1 }
 0x223   :  { %v333_v16 = vadd.f32 %v332_v12, %v331_v27 }
 0x225   :  { %392 = vpush %v333_v16 }
 0x226   :  { %394 = vpush %v353_v25 }
 0x23e   :  { %s389_s9 = spop %388 }
 0x23f   :  { %v358_v32 = vstv %s389_s9  ;;  %s391_s10 = spop %390 }
 0x240   :  { %v364_v35 = vsel %vm363_vm2, %v357_v34, %v358_v32  ;;  %v361_v41 = vstv %s391_s10 }
 0x256   :  { %s393_s11 = spop %392 }
 0x257   :  { %v359_v36 = vstv %s393_s11  ;;  %s395_s12 = spop %394 }
 0x258   :  { %v366_v40 = vsel %vm365_vm3, %v364_v35, %v359_v36  ;;  %v362_v43 = vstv %s395_s12 }
 0x259   :  { %v368_v42 = vsel %vm367_vm4, %v366_v40, %v360_v37 }
 0x25a   :  { %v370_v44 = vsel %vm369_vm5, %v368_v42, %v361_v41 }
 0x25b   :  { %v372_v45 = vsel %vm371_vm6, %v370_v44, %v362_v43 }
 0x25c   :  { %v374_v46 = vsel %vm373_vm7, %v372_v45, 0.0 }
 0x25d   :  { %v376_v20 = vsel %vm375_vm8, %v374_v46, 0.0 }
 0x25e   :  { %377 = vst [vmem:[%s706_s4] sm:$0xff] %v376_v20 }
 0x25f   :  { %382 = vsyncpa [#allocation3], 1 }
 0x260   :  { %383 = vsyncpa [#allocation5], 1 }

</bundles_post_ra>
